<compile_context>
chip_gen: v6e
topology: v6e:2x2x1
jax: 0.10.0
libtpu: 0.0.40
codegen_flags: <defaults>
</compile_context>

<pallas_src>
import functools

import jax
import jax.numpy as jnp
from jax.experimental import pallas as pl
from jax.experimental.pallas import tpu as pltpu

_X_RESIDENT_BYTES = 8 * 1024 * 1024   # budget for keeping X fully VMEM-resident
_VMEM_LIMIT_BYTES = 32 * 1024 * 1024  # explicit scoped-VMEM limit (safe on v5e/v6e/v7x)


def _round_up(v, m):
    return (v + m - 1) // m * m


def _pick_tile(np_):
    """Largest 128-multiple tile dividing np_, preferring >= 2 row tiles (v7x)."""
    for t in (512, 256, 128):
        if np_ % t == 0 and np_ // t >= 2:
            return t
    for t in (512, 256, 128):
        if np_ % t == 0:
            return t
    return 128


def _gcn_layer_kernel(*refs, apply_relu, scale_out, project, x_resident, tile):
    """out = act( dinv * ((A_int8 @ Xs) [@ W]) + b ) [* dinv], K-accumulated."""
    if project:
        a_ref, x_ref, w_ref, b_ref, dinv_ref, o_ref, acc_ref = refs
    else:
        a_ref, x_ref, b_ref, dinv_ref, o_ref, acc_ref = refs
        w_ref = None

    k = pl.program_id(1)

    @pl.when(k == 0)
    def _():
        acc_ref[...] = jnp.zeros_like(acc_ref)

    # Aggregation: 1-byte adjacency tile cast to bf16 on the VPU, bf16 x bf16
    # MXU matmul with f32 accumulation.
    if x_resident:
        x_blk = x_ref[pl.ds(pl.multiple_of(k * tile, tile), tile), :]
    else:
        x_blk = x_ref[...]
    a_blk = a_ref[...].astype(jnp.bfloat16)
    acc_ref[...] += jnp.dot(a_blk, x_blk, preferred_element_type=jnp.float32)

    @pl.when(k == pl.num_programs(1) - 1)
    def _():
        acc = acc_ref[...]
        if project:
            # bf16 x bf16 projection, f32 accumulation (native MXU rate).
            out = jnp.dot(acc.astype(jnp.bfloat16), w_ref[...],
                          preferred_element_type=jnp.float32)
        else:
            out = acc
        dinv = dinv_ref[...]                      # (tile, 1) f32, padded rows = 0
        out = dinv * out + b_ref[...]
        if apply_relu:
            out = jnp.maximum(out, 0.0)
        if scale_out:
            # Pre-scale this layer's output by d^{-1/2} so it is directly the
            # next layer's aggregation operand (also zeroes padded rows).
            out = out * dinv
        o_ref[...] = out.astype(o_ref.dtype)


def _gcn_layer(a_p, x_p, b_p, dinv_p, *, w_p, apply_relu, scale_out,
               out_dtype, tile):
    """a_p: [Np,Np] int8, x_p: [Np,Fp] bf16 (pre-scaled by dinv),
    w_p: [Fp,Gp] bf16 or None, b_p: [1,Gp] f32, dinv_p: [Np,1] f32."""
    np_ = a_p.shape[0]
    fp = x_p.shape[1]
    gp = b_p.shape[1]
    grid = (np_ // tile, np_ // tile)

    x_resident = np_ * fp * x_p.dtype.itemsize <= _X_RESIDENT_BYTES
    if x_resident:
        # Constant index_map: DMA'd once, sliced per K step inside the kernel.
        x_spec = pl.BlockSpec((np_, fp), lambda i, k: (0, 0))
    else:
        x_spec = pl.BlockSpec((tile, fp), lambda i, k: (k, 0))

    in_specs = [pl.BlockSpec((tile, tile), lambda i, k: (i, k)),  # A (int8)
                x_spec]                                           # X (bf16)
    operands = [a_p, x_p]
    if w_p is not None:
        in_specs.append(pl.BlockSpec((fp, gp), lambda i, k: (0, 0)))  # W resident
        operands.append(w_p)
    in_specs += [pl.BlockSpec((1, gp), lambda i, k: (0, 0)),      # bias
                 pl.BlockSpec((tile, 1), lambda i, k: (i, 0))]    # dinv row block
    operands += [b_p, dinv_p]

    kernel = functools.partial(
        _gcn_layer_kernel, apply_relu=apply_relu, scale_out=scale_out,
        project=w_p is not None, x_resident=x_resident, tile=tile)

    return pl.pallas_call(
        kernel,
        out_shape=jax.ShapeDtypeStruct((np_, gp), out_dtype),
        grid_spec=pltpu.PrefetchScalarGridSpec(
            num_scalar_prefetch=0,
            grid=grid,
            in_specs=in_specs,
            out_specs=pl.BlockSpec((tile, gp), lambda i, k: (i, 0)),
            scratch_shapes=[pltpu.VMEM((tile, fp), jnp.float32)],  # f32 accumulator
        ),
        compiler_params=pltpu.CompilerParams(
            dimension_semantics=("parallel", "arbitrary"),
            vmem_limit_bytes=_VMEM_LIMIT_BYTES),
    )(*operands)


def gcn_forward(x, edge_index, w1, b1, w2, b2):
    """Two-layer GCN forward.

    x:          [N, F]   float32 node features
    edge_index: [2, E]   int32 (row 0 = source, row 1 = target)
    w1: [F, H], b1: [H], w2: [H, O], b2: [O]
    returns:    [N, O] float32
    """
    n, f = x.shape
    h = w1.shape[1]
    o = w2.shape[1]

    # Lane-dense padding: N to 128-multiple (independent of tile), feature dims
    # to 128 so every output store is an unmasked vst and MXU tiles are full.
    np_ = _round_up(n, 128)
    fp = _round_up(f, 128)
    hp = _round_up(h, 128)
    op = _round_up(o, 128)
    tile = _pick_tile(np_)

    src, dst = edge_index[0], edge_index[1]

    # A + I built directly as 1-byte counts at the padded shape (no f32 N^2 pass).
    diag = jnp.arange(n, dtype=jnp.int32)
    a_p = (jnp.zeros((np_, np_), jnp.int8)
           .at[dst, src].add(jnp.int8(1))
           .at[diag, diag].add(jnp.int8(1)))

    # Degrees in O(E) from edge_index; symmetric norm folded into the X pre-scale
    # and the in-kernel finalize, so A itself stays exact integers.
    deg = jnp.ones((n,), jnp.float32).at[dst].add(1.0)
    dinv = jax.lax.rsqrt(deg)
    dinv_p = jnp.zeros((np_, 1), jnp.float32).at[:n, 0].set(dinv)  # padded rows -> 0

    # Layer-1 aggregation operand: D^{-1/2} X, bf16, lane-padded.
    xs = dinv[:, None] * x.astype(jnp.float32)

    b1_p = jnp.zeros((1, hp), jnp.float32).at[0, :h].set(b1.astype(jnp.float32))
    b2_p = jnp.zeros((1, op), jnp.float32).at[0, :o].set(b2.astype(jnp.float32))

    # ---- Layer 1: relu( dinv * (A @ Xs [@ W1]) + b1 ), output pre-scaled by
    # dinv so it feeds layer 2's aggregation directly (bf16 intermediate). ----
    if fp > hp:
        # Reassociate to A @ (Xs @ W1): tiny XLA matmul, aggregation at width Hp.
        xw = (xs @ w1.astype(jnp.float32)).astype(jnp.bfloat16)
        x1_p = jnp.zeros((np_, hp), jnp.bfloat16).at[:n, :h].set(xw)
        h1 = _gcn_layer(a_p, x1_p, b1_p, dinv_p, w_p=None,
                        apply_relu=True, scale_out=True,
                        out_dtype=jnp.bfloat16, tile=tile)
    else:
        x1_p = jnp.zeros((np_, fp), jnp.bfloat16).at[:n, :f].set(
            xs.astype(jnp.bfloat16))
        w1_p = jnp.zeros((fp, hp), jnp.bfloat16).at[:f, :h].set(
            w1.astype(jnp.bfloat16))
        h1 = _gcn_layer(a_p, x1_p, b1_p, dinv_p, w_p=w1_p,
                        apply_relu=True, scale_out=True,
                        out_dtype=jnp.bfloat16, tile=tile)

    # ---- Layer 2: dinv * (A @ H1s [@ W2]) + b2 -> f32 output. ----
    if hp > op:
        hw = (h1.astype(jnp.float32)[:, :h] @ w2.astype(jnp.float32)).astype(
            jnp.bfloat16)
        h2_in = jnp.zeros((np_, op), jnp.bfloat16).at[:, :o].set(hw[:, :o])
        out = _gcn_layer(a_p, h2_in, b2_p, dinv_p, w_p=None,
                         apply_relu=False, scale_out=False,
                         out_dtype=jnp.float32, tile=tile)
    else:
        w2_p = jnp.zeros((hp, op), jnp.bfloat16).at[:h, :o].set(
            w2.astype(jnp.bfloat16))
        out = _gcn_layer(a_p, h1, b2_p, dinv_p, w_p=w2_p,
                         apply_relu=False, scale_out=False,
                         out_dtype=jnp.float32, tile=tile)

    return out[:n, :o]


if __name__ == "__main__":
    # Small shapes consistent with the module: N nodes, num_features -> hidden -> output.
    # N=200 pads to 256 so the kernel exercises multiple row tiles and K steps.
    N = 200
    NUM_FEATURES = 8
    HIDDEN_SIZE = 32
    OUTPUT_SIZE = 16

    key = jax.random.PRNGKey(0)
    kx, kw1, kw2 = jax.random.split(key, 3)

    # Node features
    x = jax.random.normal(kx, (N, NUM_FEATURES), dtype=jnp.float32)

    # Simple bidirectional ring graph: edges (i -> i+1) and (i+1 -> i)
    idx = jnp.arange(N, dtype=jnp.int32)
    nxt = (idx + 1) % N
    src = jnp.concatenate([idx, nxt])
    dst = jnp.concatenate([nxt, idx])
    edge_index = jnp.stack([src, dst], axis=0)          # [2, 2N]

    # Deterministic parameter init (Glorot-ish weights, zero biases)
    w1 = jax.random.normal(kw1, (NUM_FEATURES, HIDDEN_SIZE), jnp.float32) * (
        1.0 / jnp.sqrt(NUM_FEATURES))
    b1 = jnp.zeros((HIDDEN_SIZE,), jnp.float32)
    w2 = jax.random.normal(kw2, (HIDDEN_SIZE, OUTPUT_SIZE), jnp.float32) * (
        1.0 / jnp.sqrt(HIDDEN_SIZE))
    b2 = jnp.zeros((OUTPUT_SIZE,), jnp.float32)

    out = gcn_forward(x, edge_index, w1, b1, w2, b2)
    jax.block_until_ready(out)
    assert out.shape == (N, OUTPUT_SIZE)

    # Pure-JAX f32 reference of the same math (kernel uses exact int8 A + f32
    # dinv, bf16 activations/weights with f32 accumulation).
    a = jnp.zeros((N, N), jnp.float32).at[edge_index[1], edge_index[0]].add(1.0)
    a = a + jnp.eye(N, dtype=jnp.float32)
    dinv_ref = jax.lax.rsqrt(a.sum(axis=1))
    a_norm = dinv_ref[:, None] * a * dinv_ref[None, :]
    ref = a_norm @ jnp.maximum(a_norm @ (x @ w1) + b1, 0.0) @ w2 + b2
    assert jnp.allclose(out, ref, atol=5e-2, rtol=5e-2), "mismatch vs reference"

    print("KERNEL_OK")
</pallas_src>

<mosaic_0001>
module attributes {stable_mosaic.version = 11 : i64} {
  func.func @_gcn_layer_kernel(%arg0: i32, %arg1: i32, %arg2: memref<128x128xi8, #tpu.memory_space<vmem>>, %arg3: memref<256x128xbf16, #tpu.memory_space<vmem>>, %arg4: memref<128x128xbf16, #tpu.memory_space<vmem>>, %arg5: memref<1x128xf32, #tpu.memory_space<vmem>>, %arg6: memref<128x1xf32, #tpu.memory_space<vmem>>, %arg7: memref<128x128xbf16, #tpu.memory_space<vmem>>, %arg8: memref<128x128xf32, #tpu.memory_space<vmem>>) attributes {dimension_semantics = [#tpu.dimension_semantics<parallel>, #tpu.dimension_semantics<arbitrary>], iteration_bounds = array<i64: 2, 2>, scalar_prefetch = 0 : i64, scratch_operands = 1 : i64, tpu.core_type = #tpu.core_type<tc>, window_params = [{transform_indices = @transform_0, window_bounds = array<i64: 128, 128>}, {pipeline_mode = #tpu.pipeline_mode<synchronous>, transform_indices = @transform_1, window_bounds = array<i64: 256, 128>}, {pipeline_mode = #tpu.pipeline_mode<synchronous>, transform_indices = @transform_2, window_bounds = array<i64: 128, 128>}, {pipeline_mode = #tpu.pipeline_mode<synchronous>, transform_indices = @transform_3, window_bounds = array<i64: 1, 128>}, {transform_indices = @transform_4, window_bounds = array<i64: 128, 1>}, {transform_indices = @transform_5, window_bounds = array<i64: 128, 128>}]} {
    %c0_i32 = arith.constant 0 : i32
    %0 = arith.cmpi eq, %arg1, %c0_i32 : i32
    %1 = arith.extui %0 : i1 to i32
    %c0_i32_0 = arith.constant 0 : i32
    %2 = arith.cmpi ne, %1, %c0_i32_0 : i32
    scf.if %2 {
      %cst_8 = arith.constant 0.000000e+00 : f32
      %16 = vector.broadcast %cst_8 : f32 to vector<128x128xf32>
      %c0_9 = arith.constant 0 : index
      %c0_10 = arith.constant 0 : index
      %17 = vector.load %arg8[%c0_9, %c0_10] : memref<128x128xf32, #tpu.memory_space<vmem>>, vector<128x128xf32>
      tpu.vector_store %arg8[%c0_9, %c0_10], %16 {strides = array<i32>} : memref<128x128xf32, #tpu.memory_space<vmem>>, vector<128x128xf32>,
    } else {
    }
    %c128_i32 = arith.constant 128 : i32
    %3 = arith.muli %arg1, %c128_i32 : i32
    %4 = tpu.assume_multiple %3, 128 : i32
    %5 = arith.index_cast %4 : i32 to index
    %c0 = arith.constant 0 : index
    %6 = vector.load %arg3[%5, %c0] : memref<256x128xbf16, #tpu.memory_space<vmem>>, vector<128x128xbf16>
    %c0_1 = arith.constant 0 : index
    %c0_2 = arith.constant 0 : index
    %7 = vector.load %arg2[%c0_1, %c0_2] : memref<128x128xi8, #tpu.memory_space<vmem>>, vector<128x128xi8>
    %8 = arith.sitofp %7 : vector<128x128xi8> to vector<128x128xbf16>
    %c0_3 = arith.constant 0 : index
    %c0_4 = arith.constant 0 : index
    %9 = vector.load %arg8[%c0_3, %c0_4] : memref<128x128xf32, #tpu.memory_space<vmem>>, vector<128x128xf32>
    %cst = arith.constant dense<0.000000e+00> : vector<128x128xf32>
    %10 = tpu.matmul %8, %6, %cst {dimension_numbers = #tpu.dot_dimension_numbers<[1], [0], [0], [1], [0, 0, 1, 1], [], []>} : vector<128x128xbf16>, vector<128x128xbf16>, vector<128x128xf32> -> vector<128x128xf32>
    %11 = arith.addf %9, %10 : vector<128x128xf32>
    %c0_5 = arith.constant 0 : index
    %c0_6 = arith.constant 0 : index
    %12 = vector.load %arg8[%c0_5, %c0_6] : memref<128x128xf32, #tpu.memory_space<vmem>>, vector<128x128xf32>
    tpu.vector_store %arg8[%c0_5, %c0_6], %11 {strides = array<i32>} : memref<128x128xf32, #tpu.memory_space<vmem>>, vector<128x128xf32>,
    %c1_i32 = arith.constant 1 : i32
    %13 = arith.cmpi eq, %arg1, %c1_i32 : i32
    %14 = arith.extui %13 : i1 to i32
    %c0_i32_7 = arith.constant 0 : i32
    %15 = arith.cmpi ne, %14, %c0_i32_7 : i32
    scf.if %15 {
      %c0_8 = arith.constant 0 : index
      %c0_9 = arith.constant 0 : index
      %16 = vector.load %arg8[%c0_8, %c0_9] : memref<128x128xf32, #tpu.memory_space<vmem>>, vector<128x128xf32>
      %17 = arith.truncf %16 : vector<128x128xf32> to vector<128x128xbf16>
      %c0_10 = arith.constant 0 : index
      %c0_11 = arith.constant 0 : index
      %18 = vector.load %arg4[%c0_10, %c0_11] : memref<128x128xbf16, #tpu.memory_space<vmem>>, vector<128x128xbf16>
      %cst_12 = arith.constant dense<0.000000e+00> : vector<128x128xf32>
      %19 = tpu.matmul %17, %18, %cst_12 {dimension_numbers = #tpu.dot_dimension_numbers<[1], [0], [0], [1], [0, 0, 1, 1], [], []>} : vector<128x128xbf16>, vector<128x128xbf16>, vector<128x128xf32> -> vector<128x128xf32>
      %c0_13 = arith.constant 0 : index
      %c0_14 = arith.constant 0 : index
      %20 = vector.load %arg6[%c0_13, %c0_14] : memref<128x1xf32, #tpu.memory_space<vmem>>, vector<128x1xf32>
      %21 = vector.broadcast %20 : vector<128x1xf32> to vector<128x128xf32>
      %22 = arith.mulf %21, %19 : vector<128x128xf32>
      %c0_15 = arith.constant 0 : index
      %c0_16 = arith.constant 0 : index
      %23 = vector.load %arg5[%c0_15, %c0_16] : memref<1x128xf32, #tpu.memory_space<vmem>>, vector<1x128xf32>
      %24 = vector.broadcast %23 : vector<1x128xf32> to vector<128x128xf32>
      %25 = arith.addf %22, %24 : vector<128x128xf32>
      %cst_17 = arith.constant 0.000000e+00 : f32
      %26 = vector.broadcast %cst_17 : f32 to vector<128x128xf32>
      %27 = arith.maximumf %25, %26 : vector<128x128xf32>
      %28 = vector.broadcast %20 : vector<128x1xf32> to vector<128x128xf32>
      %29 = arith.mulf %27, %28 : vector<128x128xf32>
      %30 = arith.truncf %29 : vector<128x128xf32> to vector<128x128xbf16>
      %c0_18 = arith.constant 0 : index
      %c0_19 = arith.constant 0 : index
      %31 = vector.load %arg7[%c0_18, %c0_19] : memref<128x128xbf16, #tpu.memory_space<vmem>>, vector<128x128xbf16>
      tpu.vector_store %arg7[%c0_18, %c0_19], %30 {strides = array<i32>} : memref<128x128xbf16, #tpu.memory_space<vmem>>, vector<128x128xbf16>,
    } else {
    }
    return
  }
  func.func @transform_0(%arg0: i32, %arg1: i32) -> (i32, i32) {
    %c0_i32 = arith.constant 0 : i32
    return %arg0, %arg1 : i32, i32
  }
  func.func @transform_1(%arg0: i32, %arg1: i32) -> (i32, i32) {
    %c0_i32 = arith.constant 0 : i32
    %c0_i32_0 = arith.constant 0 : i32
    %c0_i32_1 = arith.constant 0 : i32
    return %c0_i32, %c0_i32_0 : i32, i32
  }
  func.func @transform_2(%arg0: i32, %arg1: i32) -> (i32, i32) {
    %c0_i32 = arith.constant 0 : i32
    %c0_i32_0 = arith.constant 0 : i32
    %c0_i32_1 = arith.constant 0 : i32
    return %c0_i32, %c0_i32_0 : i32, i32
  }
  func.func @transform_3(%arg0: i32, %arg1: i32) -> (i32, i32) {
    %c0_i32 = arith.constant 0 : i32
    %c0_i32_0 = arith.constant 0 : i32
    %c0_i32_1 = arith.constant 0 : i32
    return %c0_i32, %c0_i32_0 : i32, i32
  }
  func.func @transform_4(%arg0: i32, %arg1: i32) -> (i32, i32) {
    %c0_i32 = arith.constant 0 : i32
    %c0_i32_0 = arith.constant 0 : i32
    return %arg0, %c0_i32 : i32, i32
  }
  func.func @transform_5(%arg0: i32, %arg1: i32) -> (i32, i32) {
    %c0_i32 = arith.constant 0 : i32
    %c0_i32_0 = arith.constant 0 : i32
    return %arg0, %c0_i32 : i32, i32
  }
}

</mosaic_0001>

<bundles_post_ra>
// kernel: tpu_custom_call.1
= control target key start
LH: loop header
LB: loop body
LE: loop exit
PB: predicated region body
PF: predicated region fallthrough
CT: control target
= control target key end

     0   :  { %10 = vsyncpa [#allocation5], 0  ;;  %s1981_s0 = inlined_call_operand.vmem [shape: s8[256,256], index: 0, kind: input, shape index: {}]   ;;  %s1982_s1 = inlined_call_operand.vmem [shape: bf16[256,128], index: 1, kind: input, shape index: {}]   ;;  %s1983_s2 = inlined_call_operand.hbm [shape: bf16[128,128], index: 2, kind: input, shape index: {}]   ;;  %s1984_s3 = inlined_call_operand.vmem [shape: f32[1,128], index: 3, kind: input, shape index: {}]   ;;  %s1985_s4 = inlined_call_operand.vmem [shape: f32[256,1], index: 4, kind: input, shape index: {}]   ;;  %s1986_s5 = inlined_call_operand.hbm [shape: bf16[256,128], index: 5, kind: output, shape index: {}]  }
   0x1   :  { %11 = vsyncpa [#allocation6], 0 }
   0x2   :  { %13 = vsyncpa [#allocation6 + $0x1], 0  ;;  %s1680_s18 = smov 0   ;;  %s1682_s19 = smov 0  }
   0x3   :  { %s1684_s20 = smov 0   ;;  %s1686_s21 = smov 0  }
   0x4   :  { %s1688_s22 = smov 0   ;;  %s1690_s23 = smov 0  }
   0x5   :  { %s1692_s24 = smov 0   ;;  %s1694_s25 = smov 0  }
   0x6   :  { %s1696_s26 = smov 0   ;;  %s1698_s27 = smov 0  }
   0x7 LB: > { %1993 = sst [smem:[#allocation10_spill]] %s1604_s18  ;;  %s1130_s28 = sadd.s32 4294967295, %s1640_s27   ;;  %s1640_s27 = sphi %s1698_s27, %s19_s27   ;;  %s1636_s26 = sphi %s1696_s26, %s2021_s26   ;;  %s1632_s25 = sphi %s1694_s25, %s2020_s25   ;;  %s1628_s24 = sphi %s1692_s24, %s2019_s24   ;;  %s1624_s23 = sphi %s1690_s23, %s2018_s23   ;;  %s1620_s22 = sphi %s1688_s22, %s2017_s22   ;;  %s1616_s21 = sphi %s1686_s21, %s2016_s21   ;;  %s1612_s20 = sphi %s1684_s20, %s2010_s20   ;;  %s1608_s19 = sphi %s1682_s19, %s2015_s19   ;;  %s1604_s18 = sphi %s1680_s18, %s2014_s18  }
   0x8   : > { %1994 = sst [smem:[#allocation11_spill]] %s1612_s20  ;;  %s1131_s29 = sadd.s32 4294967294, %s1640_s27  }
   0x9   : > { %s28_s30 = sadd.s32 1, %s1632_s25  ;;  %s31_s6 = sadd.s32 1, %s1636_s26 }
   0xa   : > { %p29_p0 = scmp.ge.s32.totalorder %s28_s30, 2  ;;  %s40_s7 = sadd.s32 1, %s1620_s22 }
   0xb   : > { %p47_p1 = scmp.ne.s32.totalorder %s1620_s22, %s1616_s21  ;;  %p48_p2 = scmp.eq.s32.totalorder %s1640_s27, 0 }
   0xc   : > { %s2023_s30 = smov (%p29_p0, %s28_s30), 0  ;;  %s2025_s6 = smov (!%p29_p0, %s31_s6), %s1636_s26 }
   0xd   : > { %1995 = sst [smem:[#allocation12_spill]] %s2023_s30  ;;  %s36_s8 = ssub.s32 %s1632_s25, %s2023_s30 }
   0xe   : > { %p1743_p3 = por %p48_p2, %p47_p1  ;;  %p33_p4 = scmp.ge.s32.totalorder %s2025_s6, 2 }
   0xf   : > { %s155_s10 = sadd.s32 1, %s1612_s20  ;;  %p165_p5 = scmp.ne.s32.totalorder %s1612_s20, %s1608_s19 }
  0x10   : > { %p166_p6 = scmp.eq.s32.totalorder %s1130_s28, 3  ;;  %s2027_s6 = smov (%p33_p4, %s2025_s6), 0 }
  0x11   : > { %1997 = sst [smem:[#allocation13_spill]] %s2027_s6  ;;  %p171_p8 = scmp.ne.s32.totalorder %s1608_s19, %s1604_s18 }
  0x12   : > { %p1752_p7 = por %p166_p6, %p165_p5  ;;  %s35_s12 = ssub.s32 %s1636_s26, %s2027_s6 }
  0x13   : > { %p172_p9 = scmp.eq.s32.totalorder %s1131_s29, 3  ;;  %s37_s13 = sor.u32 %s36_s8, %s35_s12 }
  0x14   : > { %s1998_s11 = scalar_select %p1752_p7, 1, 0 }
  0x15   : > { %p153_p10 = scmp.eq.s32.totalorder %s35_s12, 0  ;;  %p38_p11 = scmp.eq.s32.totalorder %s37_s13, 0 }
  0x16   : > { %p1760_p12 = por %p172_p9, %p171_p8  ;;  %p1132_p13 = scmp.ge.s32.totalorder %s1640_s27, 1 }
  0x17   : > { %s1765_s15 = scalar_select %p153_p10, %s1612_s20, %s155_s10  }
  0x18   : > { %s1999_s14 = scalar_select %p1760_p12, 1, 0 }
  0x19   : > { %2001 = sst [smem:[#allocation15_spill]] %s1765_s15  ;;  %p179_p0 = scmp.lt.s32.totalorder %s1640_s27, 5 }
  0x1a   : > { %2000 = sst [smem:[#allocation14_spill]] %s1999_s14  ;;  %p1772_p1 = scmp.eq.s32.totalorder %s1130_s28, 0 }
  0x1b   : > { %s1768_s16 = scalar_select %p38_p11, %s1620_s22, %s40_s7  }
  0x1c   : > { %p1776_p2 = pnand %p1132_p13, %p179_p0  ;;  %s1642_s8 = smov [#allocation4]  }
  0x1d   : > { %2002 = sst [smem:[#allocation16_spill]] %s1768_s16  ;;  %s194_s12 = sshll.u32 %s1642_s8, 4  ;;  %s195_s12 = int_to_ptr.vmem [resolvable:$true] %s194_s12 }
  0x1e   : > { %p1386_p4 = pneg %p1776_p2  ;;  %s1513_s7 = scalar_lea.vmem %s195_s12, 1024 }
  0x1f   : > { %p1514_p8 = scmp.ne.s32.totalorder %s195_s12, %s1513_s7  ;;  %p1521_p11 = scmp.lt.s32.totalorder %s195_s12, %s195_s12 }
  0x20   : > { %p1387_p5 = pnand %p1772_p1, %p1386_p4  ;;  %p1522_p12 = scmp.lt.s32.totalorder %s1513_s7, %s1513_s7 }
  0x22   : > { %p1504_p6 = pneg %p1387_p5  ;;  %p1523_p7 = por %p1522_p12, %p1521_p11 }
  0x24   : > { %p1516_p9 = pnand %p1514_p8, %p1504_p6 }
  0x26   : > { %p1517_p10 = pneg %p1516_p9 }
  0x28   : > { %p1524_p13 = pnand %p1523_p7, %p1517_p10 }
  0x2a   : > { %1527 = shalt.err (!%p1524_p13)
}
  0x2b   : > { %s1643_s28 = smov 64   ;;  %s1644_s10 = smov 4  }
  0x2c   : > { %1389 = dma.hbm_to_vmem [thread:$0]  (!%p1387_p5), %s1983_s2, 1024, %s195_s12, [#allocation5], %s1643_s28, %s1643_s28, %s1644_s10  }
  0x2d   : > { %p1134_p0 = scmp.ge.s32.totalorder %s1640_s27, 4 }
  0x2f   : > { %207 = sbr.rel (%p1134_p0) target bundleno = 60 (0x3c), region = 28 }
  0x34   : > { %210 = sbr.rel (!%p1743_p3) target bundleno = 60 (0x3c), region = 32  ;;  %s212_s8 = sand.u32 (%p1743_p3), 1, %s1620_s22  }
  0x35   : > { %s1187_s7 = sshll.u32 (%p1743_p3), %s1636_s26, 3  ;;  %s1135_s30 = sshll.u32 (%p1743_p3), %s212_s8, 5 }
  0x36   : > { %s217_s16 = sadd.s32 (%p1743_p3), %s1632_s25, %s1187_s7  ;;  %s214_s6 = scalar_lea.vmem (%p1743_p3), [#allocation3], %s1135_s30 }
  0x37   : > { %s1138_s15 = sshll.u32 (%p1743_p3), %s217_s16, 3 }
  0x38   : > { %s219_s18 = scalar_lea.vmem (%p1743_p3), %s1981_s0, %s1138_s15 }
  0x39   : > { %v254_v0 = vld [vmem:[%s219_s18] sm:$0xff]  ;;  %v256_v1 = vld [vmem:[%s219_s18 + $0x10] sm:$0xff] }
  0x3a   : > { %v258_v2 = vld [vmem:[%s219_s18 + $0x20] sm:$0xff]  ;;  %255 = vst [vmem:[%s214_s6] sm:$0xff] %v254_v0  ;;  %257 = vst [vmem:[%s214_s6 + $0x8] sm:$0xff] %v256_v1  ;;  %v260_v3 = vld [vmem:[%s219_s18 + $0x30] sm:$0xff] }
  0x3b   : > { %259 = vst [vmem:[%s214_s6 + $0x10] sm:$0xff] %v258_v2  ;;  %261 = vst [vmem:[%s214_s6 + $0x18] sm:$0xff] %v260_v3 }
  0x3c PF: > { %279 = sbr.rel (%p1776_p2) target bundleno = 608 (0x260), region = 74  ;;  %s282_s9 = sand.u32 (!%p1776_p2), 1, %s1616_s21  }
  0x3d   : > { %s1140_s16 = sshll.u32 (!%p1776_p2), %s282_s9, 5 }
  0x3e   : > { %s1799_s20 = scalar_lea.vmem (!%p1776_p2), [#allocation3], %s1140_s16 }
  0x41   : > { %1595 = dma.done.wait (%p1772_p1), [#allocation5], 1024  }
  0x42   : > { %1597 = vsyncadd (%p1772_p1), [#allocation5], 4294966272  ;;  %s315_s18 = sand.u32 1, %s1608_s19   ;;  %s1143_s30 = sshll.u32 %s1628_s24, 4 }
  0x43   : > { %s1142_s14 = sshll.u32 %s315_s18, 6  ;;  %p320_p3 = scmp.lt.s32.totalorder %s1143_s30, 31 }
  0x44   : > { %s1814_s28 = scalar_lea.vmem [#allocation7], %s1142_s14  ;;  %p1145_p7 = scmp.ne.s32.totalorder %s1624_s23, 0 }
  0x45   : > { %s2029_s30 = smov (!%p320_p3, %s1143_s30), 31 }
  0x46   : > { %s1144_s15 = sshll.u32 %s2029_s30, 3  ;;  %330 = sbr.rel (%p1145_p7) target bundleno = 84 (0x54), region = 86 }
  0x47   : > { %s1812_s12 = scalar_lea.vmem %s1985_s4, %s1144_s15 }
  0x4b   : > { %v1645_v4 = vmov 0.0  }
  0x4c   : > { %331 = vst [vmem:[#allocation2 + $0x30] sm:$0xff] %v1645_v4  ;;  %332 = vst [vmem:[#allocation2] sm:$0xff] %v1645_v4 }
  0x4d   : > { %333 = vst [vmem:[#allocation2 + $0x58] sm:$0xff] %v1645_v4  ;;  %334 = vst [vmem:[#allocation2 + $0x18] sm:$0xff] %v1645_v4 }
  0x4e   : > { %335 = vst [vmem:[#allocation2 + $0x50] sm:$0xff] %v1645_v4  ;;  %336 = vst [vmem:[#allocation2 + $0x68] sm:$0xff] %v1645_v4 }
  0x4f   : > { %337 = vst [vmem:[#allocation2 + $0x8] sm:$0xff] %v1645_v4  ;;  %338 = vst [vmem:[#allocation2 + $0x48] sm:$0xff] %v1645_v4 }
  0x50   : > { %339 = vst [vmem:[#allocation2 + $0x40] sm:$0xff] %v1645_v4  ;;  %340 = vst [vmem:[#allocation2 + $0x20] sm:$0xff] %v1645_v4 }
  0x51   : > { %341 = vst [vmem:[#allocation2 + $0x10] sm:$0xff] %v1645_v4  ;;  %342 = vst [vmem:[#allocation2 + $0x38] sm:$0xff] %v1645_v4 }
  0x52   : > { %343 = vst [vmem:[#allocation2 + $0x60] sm:$0xff] %v1645_v4  ;;  %344 = vst [vmem:[#allocation2 + $0x70] sm:$0xff] %v1645_v4 }
  0x53   : > { %345 = vst [vmem:[#allocation2 + $0x78] sm:$0xff] %v1645_v4  ;;  %346 = vst [vmem:[#allocation2 + $0x28] sm:$0xff] %v1645_v4 }
  0x54 PF: > { %s1146_s17 = sshll.u32 %s1624_s23, 7  ;;  %v368_v5 = vld [vmem:[%s1799_s20] sm:$0xff]  ;;  %v370_v6 = vld [vmem:[%s1799_s20 + $0x10] sm:$0xff]  ;;  %v369_v17 = vld [vmem:[%s1799_s20 + $0x8] sm:$0xff]  ;;  %p1156_p12 = scmp.ne.s32.totalorder %s1624_s23, 1 }
  0x55   : > { %s348_s10 = sshra.s32 %s1146_s17, 3  ;;  %v372_v7 = vunpack.c.l.s8.bf16 %v368_v5  ;;  %v376_v8 = vunpack.c.l.s8.bf16 %v370_v6  ;;  %v371_v18 = vld [vmem:[%s1799_s20 + $0x18] sm:$0xff]  ;;  %v373_v19 = vunpack.c.h.s8.bf16 %v368_v5  ;;  %v377_v20 = vunpack.c.h.s8.bf16 %v370_v6  ;;  %v380_v29 = vld [vmem:[#allocation2 + $0x30] sm:$0xff]  ;;  %v381_v41 = vld [vmem:[#allocation2] sm:$0xff] }
  0x56   : > { %s1147_s13 = sshll.u32 %s348_s10, 2  ;;  %v374_v21 = vunpack.c.l.s8.bf16 %v369_v17  ;;  %v378_v22 = vunpack.c.l.s8.bf16 %v371_v18  ;;  %v375_v23 = vunpack.c.h.s8.bf16 %v369_v17  ;;  %v379_v24 = vunpack.c.h.s8.bf16 %v371_v18  ;;  %v382_v25 = vld [vmem:[#allocation2 + $0x58] sm:$0xff]  ;;  %v386_v47 = vld [vmem:[#allocation2 + $0x8] sm:$0xff]  ;;  %v384_v53 = vld [vmem:[#allocation2 + $0x50] sm:$0xff] }
  0x57   : > { %s1823_s6 = scalar_lea.vmem %s1982_s1, %s1147_s13  ;;  %1300 = vmatprep.mubr.bf16.mxu0 %v372_v7  ;;  %1308 = vmatprep.mubr.bf16.mxu1 %v376_v8  ;;  %v388_v30 = vld [vmem:[#allocation2 + $0x40] sm:$0xff]  ;;  %v383_v35 = vld [vmem:[#allocation2 + $0x18] sm:$0xff]  ;;  %v387_v59 = vld [vmem:[#allocation2 + $0x48] sm:$0xff] }
  0x58   : > { %v1484_v9 = vld [vmem:[%s1823_s6 + $0x38] sm:$0xff]   ;;  %v1485_v10 = vld [vmem:[%s1823_s6 + $0x30] sm:$0xff]   ;;  %v1486_v11 = vld [vmem:[%s1823_s6 + $0x28] sm:$0xff]  }
  0x59   : > { %1284 = vmatprep.subr.bf16.mxu0 %v1484_v9  ;;  %1348 = vmatprep.subr.bf16.mxu1 %v1484_v9  ;;  %v1487_v12 = vld [vmem:[%s1823_s6 + $0x20] sm:$0xff]   ;;  %v1488_v13 = vld [vmem:[%s1823_s6 + $0x18] sm:$0xff]   ;;  %v1489_v14 = vld [vmem:[%s1823_s6 + $0x10] sm:$0xff]  }
  0x5a   : > { %1285 = vmatpush3.bf16.msra.mxu0 %v1484_v9  ;;  %1356 = vmatpush3.bf16.msra.mxu1 %v1484_v9  ;;  %v1490_v15 = vld [vmem:[%s1823_s6 + $0x8] sm:$0xff]   ;;  %v1491_v16 = vld [vmem:[%s1823_s6] sm:$0xff]   ;;  %v390_v26 = vld [vmem:[#allocation2 + $0x10] sm:$0xff] }
  0x5b   : > { %1286 = vmatprep.subr.bf16.mxu0 %v1485_v10  ;;  %1349 = vmatprep.subr.bf16.mxu1 %v1485_v10  ;;  %v391_v36 = vld [vmem:[#allocation2 + $0x38] sm:$0xff]  ;;  %v389_v42 = vld [vmem:[#allocation2 + $0x20] sm:$0xff]  ;;  %v395_v60 = vld [vmem:[#allocation2 + $0x28] sm:$0xff] }
  0x5c   : > { %v394_v48 = vld [vmem:[#allocation2 + $0x78] sm:$0xff]  ;;  %v392_v54 = vld [vmem:[#allocation2 + $0x60] sm:$0xff]  ;;  %v385_v1 = vld [vmem:[#allocation2 + $0x68] sm:$0xff] }
  0x5d   : > { %v393_v2 = vld [vmem:[#allocation2 + $0x70] sm:$0xff] }
  0x5e   : > { %1287 = vmatpush3.bf16.msra.mxu0 %v1485_v10  ;;  %1357 = vmatpush3.bf16.msra.mxu1 %v1485_v10 }
  0x5f   : > { %1288 = vmatprep.subr.bf16.mxu0 %v1486_v11  ;;  %1350 = vmatprep.subr.bf16.mxu1 %v1486_v11 }
  0x62   : > { %1289 = vmatpush3.bf16.msra.mxu0 %v1486_v11  ;;  %1358 = vmatpush3.bf16.msra.mxu1 %v1486_v11 }
  0x63   : > { %1290 = vmatprep.subr.bf16.mxu0 %v1487_v12  ;;  %1351 = vmatprep.subr.bf16.mxu1 %v1487_v12 }
  0x66   : > { %1291 = vmatpush3.bf16.msra.mxu0 %v1487_v12  ;;  %1359 = vmatpush3.bf16.msra.mxu1 %v1487_v12 }
  0x67   : > { %1292 = vmatprep.subr.bf16.mxu0 %v1488_v13  ;;  %1352 = vmatprep.subr.bf16.mxu1 %v1488_v13 }
  0x6a   : > { %1293 = vmatpush3.bf16.msra.mxu0 %v1488_v13  ;;  %1360 = vmatpush3.bf16.msra.mxu1 %v1488_v13 }
  0x6b   : > { %1294 = vmatprep.subr.bf16.mxu0 %v1489_v14  ;;  %1353 = vmatprep.subr.bf16.mxu1 %v1489_v14 }
  0x6e   : > { %1295 = vmatpush3.bf16.msra.mxu0 %v1489_v14  ;;  %1361 = vmatpush3.bf16.msra.mxu1 %v1489_v14 }
  0x6f   : > { %1296 = vmatprep.subr.bf16.mxu0 %v1490_v15  ;;  %1354 = vmatprep.subr.bf16.mxu1 %v1490_v15 }
  0x72   : > { %1297 = vmatpush3.bf16.msra.mxu0 %v1490_v15  ;;  %1362 = vmatpush3.bf16.msra.mxu1 %v1490_v15 }
  0x73   : > { %1298 = vmatprep.subr.bf16.mxu0 %v1491_v16  ;;  %1355 = vmatprep.subr.bf16.mxu1 %v1491_v16 }
  0x76   : > { %1299 = vmatpush3.bf16.msra.mxu0 %v1491_v16  ;;  %1363 = vmatpush3.bf16.msra.mxu1 %v1491_v16 }
  0x79   : > { %1301 = vmatmul.mubr.bf16.vlgmr.msra.gmra.mxu0 %v373_v19  ;;  %1309 = vmatmul.mubr.bf16.vlgmr.msra.gmra.mxu1 %v377_v20 }
  0x7a   : > { %1304 = vmatprep.mubr.bf16.mxu0 %v374_v21  ;;  %1312 = vmatprep.mubr.bf16.mxu1 %v378_v22 }
  0x81   : > { %1305 = vmatmul.mubr.bf16.gmra.mxu0 %v375_v23  ;;  %1313 = vmatmul.mubr.bf16.gmra.mxu1 %v379_v24 }
 0x139   : > { %v1302_v27 = vpop.f32.mrf.mxu0  ;;  %v1310_v28 = vpop.f32.mrf.mxu1 }
 0x13a   : > { %v543_v31 = vadd.f32 %v1302_v27, %v382_v25  ;;  %v551_v32 = vadd.f32 %v1310_v28, %v390_v26 }
 0x13b   : > { %v478_v33 = vpop.f32.mrf.mxu0  ;;  %v510_v34 = vpop.f32.mrf.mxu1 }
 0x13c   : > { %559 = vst [vmem:[#allocation2 + $0x58] sm:$0xff] %v543_v31  ;;  %567 = vst [vmem:[#allocation2 + $0x10] sm:$0xff] %v551_v32  ;;  %v541_v37 = vadd.f32 %v478_v33, %v380_v29  ;;  %v549_v38 = vadd.f32 %v510_v34, %v388_v30 }
 0x13d   : > { %v1303_v39 = vpop.f32.mrf.mxu0  ;;  %v1311_v40 = vpop.f32.mrf.mxu1 }
 0x13e   : > { %557 = vst [vmem:[#allocation2 + $0x30] sm:$0xff] %v541_v37  ;;  %565 = vst [vmem:[#allocation2 + $0x40] sm:$0xff] %v549_v38  ;;  %v544_v43 = vadd.f32 %v1303_v39, %v383_v35  ;;  %v552_v44 = vadd.f32 %v1311_v40, %v391_v36 }
 0x13f   : > { %v481_v45 = vpop.f32.mrf.mxu0  ;;  %v513_v46 = vpop.f32.mrf.mxu1 }
 0x140   : > { %560 = vst [vmem:[#allocation2 + $0x18] sm:$0xff] %v544_v43  ;;  %568 = vst [vmem:[#allocation2 + $0x38] sm:$0xff] %v552_v44  ;;  %v542_v49 = vadd.f32 %v481_v45, %v381_v41  ;;  %v550_v50 = vadd.f32 %v513_v46, %v389_v42 }
 0x141   : > { %v1306_v51 = vpop.f32.mrf.mxu0  ;;  %v1314_v52 = vpop.f32.mrf.mxu1 }
 0x142   : > { %558 = vst [vmem:[#allocation2] sm:$0xff] %v542_v49  ;;  %566 = vst [vmem:[#allocation2 + $0x20] sm:$0xff] %v550_v50  ;;  %v547_v55 = vadd.f32 %v1306_v51, %v386_v47  ;;  %v555_v56 = vadd.f32 %v1314_v52, %v394_v48 }
 0x143   : > { %v494_v57 = vpop.f32.mrf.mxu0  ;;  %v526_v58 = vpop.f32.mrf.mxu1 }
 0x144   : > { %563 = vst [vmem:[#allocation2 + $0x8] sm:$0xff] %v547_v55  ;;  %571 = vst [vmem:[#allocation2 + $0x78] sm:$0xff] %v555_v56  ;;  %v545_v61 = vadd.f32 %v494_v57, %v384_v53  ;;  %v553_v62 = vadd.f32 %v526_v58, %v392_v54 }
 0x145   : > { %v1307_v63 = vpop.f32.mrf.mxu0  ;;  %v1315_v0 = vpop.f32.mrf.mxu1 }
 0x146   : > { %561 = vst [vmem:[#allocation2 + $0x50] sm:$0xff] %v545_v61  ;;  %569 = vst [vmem:[#allocation2 + $0x60] sm:$0xff] %v553_v62  ;;  %v548_v3 = vadd.f32 %v1307_v63, %v387_v59  ;;  %v556_v4 = vadd.f32 %v1315_v0, %v395_v60  ;;  %576 = sbr.rel (%p1156_p12) target bundleno = 583 (0x247), region = 90 }
 0x147   : > { %v497_v5 = vpop.f32.mrf.mxu0  ;;  %v529_v6 = vpop.f32.mrf.mxu1 }
 0x148   : > { %564 = vst [vmem:[#allocation2 + $0x48] sm:$0xff] %v548_v3  ;;  %572 = vst [vmem:[#allocation2 + $0x28] sm:$0xff] %v556_v4  ;;  %v546_v7 = vadd.f32 %v497_v5, %v385_v1  ;;  %v554_v8 = vadd.f32 %v529_v6, %v393_v2 }
 0x14a   : > { %562 = vst [vmem:[#allocation2 + $0x68] sm:$0xff] %v546_v7  ;;  %570 = vst [vmem:[#allocation2 + $0x70] sm:$0xff] %v554_v8 }
 0x14b   : > { %v1494_v9 = vld [vmem:[#allocation4 + $0x38] sm:$0xff]   ;;  %v1495_v10 = vld [vmem:[#allocation4 + $0x30] sm:$0xff]   ;;  %v1646_v11 = vmov 0   ;;  %v1496_v12 = vld [vmem:[#allocation4 + $0x28] sm:$0xff]  }
 0x14c   : > { %1493 = vset.pattern.permute.xlu1 %v1646_v11  ;;  %1492 = vset.pattern.permute.xlu0 %v1646_v11  ;;  %v1497_v13 = vld [vmem:[#allocation4 + $0x20] sm:$0xff]   ;;  %v577_v14 = vld [vmem:[#allocation2 + $0x30] sm:$0xff]  ;;  %v1498_v20 = vld [vmem:[#allocation4 + $0x18] sm:$0xff]  }
 0x14d   : > { %1316 = vmatprep.subr.bf16.mxu0 %v1494_v9  ;;  %1364 = vmatprep.subr.bf16.mxu1 %v1494_v9  ;;  %v578_v15 = vld [vmem:[#allocation2] sm:$0xff]  ;;  %v764_v21 = vld [vmem:[%s1812_s12 + $0x10] sm:$0xff]  ;;  %v765_v23 = vld [vmem:[%s1812_s12 + $0x18] sm:$0xff] }
 0x14e   : > { %1317 = vmatpush3.bf16.msra.mxu0 %v1494_v9  ;;  %1372 = vmatpush3.bf16.msra.mxu1 %v1494_v9  ;;  %v585_v16 = vld [vmem:[#allocation2 + $0x40] sm:$0xff]  ;;  %v593_v17 = vpack.c.bf16 %v578_v15, %v577_v14  ;;  %v763_v24 = vld [vmem:[%s1812_s12 + $0x8] sm:$0xff]  ;;  %v1499_v25 = vld [vmem:[#allocation4 + $0x10] sm:$0xff]  }
 0x14f   : > { %1318 = vmatprep.subr.bf16.mxu0 %v1495_v10  ;;  %1365 = vmatprep.subr.bf16.mxu1 %v1495_v10  ;;  %v586_v18 = vld [vmem:[#allocation2 + $0x20] sm:$0xff]  ;;  %v767_v26 = vld [vmem:[%s1812_s12 + $0x28] sm:$0xff]  ;;  %v769_v29 = vld [vmem:[%s1812_s12 + $0x38] sm:$0xff] }
 0x150   : > { %v597_v19 = vpack.c.bf16 %v586_v18, %v585_v16  ;;  %1332 = vmatprep.mubr.bf16.mxu0 %v593_v17  ;;  %v762_v22 = vld [vmem:[%s1812_s12] sm:$0xff]  ;;  %790 = vperm.xlu1 %1493, %v764_v21   ;;  %v1500_v28 = vld [vmem:[#allocation4 + $0x8] sm:$0xff]   ;;  %v768_v30 = vld [vmem:[%s1812_s12 + $0x30] sm:$0xff] }
 0x151   : > { %780 = vperm.xlu0 %1492, %v762_v22   ;;  %v766_v27 = vld [vmem:[%s1812_s12 + $0x20] sm:$0xff]  ;;  %v579_v32 = vld [vmem:[#allocation2 + $0x58] sm:$0xff]  ;;  %v587_v34 = vld [vmem:[#allocation2 + $0x10] sm:$0xff] }
 0x152   : > { %1319 = vmatpush3.bf16.msra.mxu0 %v1495_v10  ;;  %1373 = vmatpush3.bf16.msra.mxu1 %v1495_v10  ;;  %v1501_v31 = vld [vmem:[#allocation4] sm:$0xff]   ;;  %v580_v33 = vld [vmem:[#allocation2 + $0x18] sm:$0xff]  ;;  %v581_v36 = vld [vmem:[#allocation2 + $0x50] sm:$0xff] }
 0x153   : > { %1320 = vmatprep.subr.bf16.mxu0 %v1496_v12  ;;  %1366 = vmatprep.subr.bf16.mxu1 %v1496_v12  ;;  %v588_v35 = vld [vmem:[#allocation2 + $0x38] sm:$0xff]  ;;  %v771_v37 = vld [vmem:[%s1812_s12 + $0x48] sm:$0xff]  ;;  %v770_v38 = vld [vmem:[%s1812_s12 + $0x40] sm:$0xff]  ;;  %v594_v42 = vpack.c.bf16 %v580_v33, %v579_v32 }
 0x154   : > { %1340 = vmatprep.mubr.bf16.mxu1 %v597_v19  ;;  %795 = vperm.xlu1 %1493, %v765_v23   ;;  %v582_v39 = vld [vmem:[#allocation2 + $0x68] sm:$0xff]  ;;  %v589_v40 = vld [vmem:[#allocation2 + $0x60] sm:$0xff]  ;;  %v590_v41 = vld [vmem:[#allocation2 + $0x70] sm:$0xff]  ;;  %v598_v43 = vpack.c.bf16 %v588_v35, %v587_v34 }
 0x155   : > { %785 = vperm.xlu0 %1492, %v763_v24   ;;  %v595_v44 = vpack.c.bf16 %v582_v39, %v581_v36  ;;  %v599_v45 = vpack.c.bf16 %v590_v41, %v589_v40  ;;  %v773_v46 = vld [vmem:[%s1812_s12 + $0x58] sm:$0xff]  ;;  %v772_v47 = vld [vmem:[%s1812_s12 + $0x50] sm:$0xff]  ;;  %v583_v48 = vld [vmem:[#allocation2 + $0x8] sm:$0xff] }
 0x156   : > { %1321 = vmatpush3.bf16.msra.mxu0 %v1496_v12  ;;  %1374 = vmatpush3.bf16.msra.mxu1 %v1496_v12  ;;  %v584_v49 = vld [vmem:[#allocation2 + $0x48] sm:$0xff]  ;;  %v591_v50 = vld [vmem:[#allocation2 + $0x78] sm:$0xff]  ;;  %v774_v53 = vld [vmem:[%s1812_s12 + $0x60] sm:$0xff] }
 0x157   : > { %1322 = vmatprep.subr.bf16.mxu0 %v1497_v13  ;;  %1367 = vmatprep.subr.bf16.mxu1 %v1497_v13  ;;  %v592_v51 = vld [vmem:[#allocation2 + $0x28] sm:$0xff]  ;;  %v596_v54 = vpack.c.bf16 %v584_v49, %v583_v48  ;;  %v777_v56 = vld [vmem:[%s1812_s12 + $0x78] sm:$0xff]  ;;  %v776_v57 = vld [vmem:[%s1812_s12 + $0x70] sm:$0xff] }
 0x158   : > { %805 = vperm.xlu1 %1493, %v767_v26   ;;  %v775_v52 = vld [vmem:[%s1812_s12 + $0x68] sm:$0xff]  ;;  %v600_v55 = vpack.c.bf16 %v592_v51, %v591_v50  ;;  %v1865_v6 = vld [vmem:[%s1984_s3] ss:$0 sm:$0xff] }
 0x159   : > { %800 = vperm.xlu0 %1492, %v766_v27  }
 0x15a   : > { %1323 = vmatpush3.bf16.msra.mxu0 %v1497_v13  ;;  %1375 = vmatpush3.bf16.msra.mxu1 %v1497_v13 }
 0x15b   : > { %1324 = vmatprep.subr.bf16.mxu0 %v1498_v20  ;;  %1368 = vmatprep.subr.bf16.mxu1 %v1498_v20 }
 0x15c   : > { %815 = vperm.xlu1 %1493, %v769_v29  }
 0x15d   : > { %810 = vperm.xlu0 %1492, %v768_v30  }
 0x15e   : > { %1325 = vmatpush3.bf16.msra.mxu0 %v1498_v20  ;;  %1376 = vmatpush3.bf16.msra.mxu1 %v1498_v20 }
 0x15f   : > { %1326 = vmatprep.subr.bf16.mxu0 %v1499_v25  ;;  %1369 = vmatprep.subr.bf16.mxu1 %v1499_v25 }
 0x160   : > { %825 = vperm.xlu1 %1493, %v771_v37  }
 0x161   : > { %820 = vperm.xlu0 %1492, %v770_v38  }
 0x162   : > { %1327 = vmatpush3.bf16.msra.mxu0 %v1499_v25  ;;  %1377 = vmatpush3.bf16.msra.mxu1 %v1499_v25 }
 0x163   : > { %1328 = vmatprep.subr.bf16.mxu0 %v1500_v28  ;;  %1370 = vmatprep.subr.bf16.mxu1 %v1500_v28 }
 0x164   : > { %835 = vperm.xlu1 %1493, %v773_v46  }
 0x165   : > { %830 = vperm.xlu0 %1492, %v772_v47  }
 0x166   : > { %1329 = vmatpush3.bf16.msra.mxu0 %v1500_v28  ;;  %1378 = vmatpush3.bf16.msra.mxu1 %v1500_v28 }
 0x167   : > { %1330 = vmatprep.subr.bf16.mxu0 %v1501_v31  ;;  %1371 = vmatprep.subr.bf16.mxu1 %v1501_v31 }
 0x168   : > { %845 = vperm.xlu1 %1493, %v775_v52  }
 0x169   : > { %840 = vperm.xlu0 %1492, %v774_v53  }
 0x16a   : > { %1331 = vmatpush3.bf16.msra.mxu0 %v1501_v31  ;;  %1379 = vmatpush3.bf16.msra.mxu1 %v1501_v31 }
 0x16c   : > { %855 = vperm.xlu1 %1493, %v777_v56  }
 0x16d   : > { %1333 = vmatmul.mubr.bf16.vlgmr.msra.gmra.mxu0 %v594_v42  ;;  %1341 = vmatmul.mubr.bf16.vlgmr.msra.gmra.mxu1 %v598_v43 }
 0x16e   : > { %1336 = vmatprep.mubr.bf16.mxu0 %v595_v44  ;;  %1344 = vmatprep.mubr.bf16.mxu1 %v599_v45 }
 0x16f   : > { %850 = vperm.xlu0 %1492, %v776_v57  }
 0x175   : > { %1337 = vmatmul.mubr.bf16.gmra.mxu0 %v596_v54  ;;  %1345 = vmatmul.mubr.bf16.gmra.mxu1 %v600_v55 }
 0x1cb   : > { %v791_v60 = vpop.permute.xlu1 %790 }
 0x1cc   : > { %v781_v58 = vpop.permute.xlu0 %780 }
 0x1cf   : > { %v796_v62 = vpop.permute.xlu1 %795 }
 0x1d0   : > { %v1852_v59 = vpop.permute.xlu0 %785 }
 0x1d3   : > { %v1858_v0 = vpop.permute.xlu1 %805 }
 0x1d4   : > { %v1854_v61 = vpop.permute.xlu0 %800 }
 0x1d7   : > { %v1860_v2 = vpop.permute.xlu1 %815 }
 0x1d8   : > { %v1856_v63 = vpop.permute.xlu0 %810 }
 0x1db   : > { %v826_v4 = vpop.permute.xlu1 %825 }
 0x1dc   : > { %v821_v1 = vpop.permute.xlu0 %820 }
 0x1df   : > { %v836_v13 = vpop.permute.xlu1 %835 }
 0x1e0   : > { %v831_v3 = vpop.permute.xlu0 %830 }
 0x1e3   : > { %v1878_v35 = vpop.permute.xlu1 %845 }
 0x1e4   : > { %v1867_v8 = vpop.permute.xlu0 %840 }
 0x1ea   : > { %v1873_v26 = vpop.permute.xlu0 %850 }
 0x22d   : > { %v1334_v5 = vpop.f32.mrf.mxu0  ;;  %v1342_v7 = vpop.f32.mrf.mxu1 }
 0x22e   : > { %v860_v9 = vmul.f32 %v1334_v5, %v791_v60  ;;  %v868_v10 = vmul.f32 %v1342_v7, %v831_v3 }
 0x22f   : > { %v699_v11 = vpop.f32.mrf.mxu0  ;;  %v731_v12 = vpop.f32.mrf.mxu1 }
 0x230   : > { %v883_v14 = vadd.f32 %v1865_v6, %v860_v9  ;;  %v891_v15 = vadd.f32 %v1865_v6, %v868_v10  ;;  %v858_v16 = vmul.f32 %v781_v58, %v699_v11  ;;  %v866_v17 = vmul.f32 %v821_v1, %v731_v12  ;;  %v856_v12 = vpop.permute.xlu1 %855 }
 0x231   : > { %v1335_v18 = vpop.f32.mrf.mxu0  ;;  %v1343_v19 = vpop.f32.mrf.mxu1 }
 0x232   : > { %v881_v20 = vadd.f32 %v1865_v6, %v858_v16  ;;  %v889_v21 = vadd.f32 %v1865_v6, %v866_v17  ;;  %v861_v22 = vmul.f32 %v1335_v18, %v796_v62  ;;  %v869_v23 = vmul.f32 %v1343_v19, %v836_v13 }
 0x233   : > { %v702_v24 = vpop.f32.mrf.mxu0  ;;  %v734_v25 = vpop.f32.mrf.mxu1  ;;  %v899_v27 = vmax.f32 %v883_v14, 0.0  ;;  %v907_v28 = vmax.f32 %v891_v15, 0.0 }
 0x234   : > { %v884_v29 = vadd.f32 %v1865_v6, %v861_v22  ;;  %v892_v30 = vadd.f32 %v1865_v6, %v869_v23  ;;  %v859_v31 = vmul.f32 %v1852_v59, %v702_v24  ;;  %v867_v32 = vmul.f32 %v826_v4, %v734_v25 }
 0x235   : > { %v1338_v33 = vpop.f32.mrf.mxu0  ;;  %v1346_v34 = vpop.f32.mrf.mxu1  ;;  %v897_v36 = vmax.f32 %v881_v20, 0.0  ;;  %v905_v37 = vmax.f32 %v889_v21, 0.0  ;;  %v915_v46 = vmul.f32 %v899_v27, %v791_v60  ;;  %v923_v47 = vmul.f32 %v907_v28, %v831_v3 }
 0x236   : > { %v864_v38 = vmul.f32 %v1338_v33, %v1856_v63  ;;  %v872_v39 = vmul.f32 %v1346_v34, %v1873_v26  ;;  %v900_v40 = vmax.f32 %v884_v29, 0.0  ;;  %v908_v41 = vmax.f32 %v892_v30, 0.0 }
 0x237   : > { %v882_v42 = vadd.f32 %v1865_v6, %v859_v31  ;;  %v890_v43 = vadd.f32 %v1865_v6, %v867_v32  ;;  %v715_v44 = vpop.f32.mrf.mxu0  ;;  %v747_v45 = vpop.f32.mrf.mxu1  ;;  %v913_v56 = vmul.f32 %v897_v36, %v781_v58  ;;  %v921_v57 = vmul.f32 %v905_v37, %v821_v1 }
 0x238   : > { %v862_v48 = vmul.f32 %v1854_v61, %v715_v44  ;;  %v870_v49 = vmul.f32 %v1867_v8, %v747_v45  ;;  %v916_v50 = vmul.f32 %v900_v40, %v796_v62  ;;  %v924_v51 = vmul.f32 %v908_v41, %v836_v13 }
 0x239   : > { %v898_v52 = vmax.f32 %v882_v42, 0.0  ;;  %v906_v53 = vmax.f32 %v890_v43, 0.0  ;;  %v1339_v54 = vpop.f32.mrf.mxu0  ;;  %v1347_v55 = vpop.f32.mrf.mxu1  ;;  %v887_v5 = vadd.f32 %v1865_v6, %v864_v38  ;;  %v895_v7 = vadd.f32 %v1865_v6, %v872_v39 }
 0x23a   : > { %v1213_v60 = vpack.c.bf16 %v916_v50, %v915_v46  ;;  %v1233_v3 = vpack.c.bf16 %v924_v51, %v923_v47  ;;  %v885_v13 = vadd.f32 %v1865_v6, %v862_v48  ;;  %v893_v14 = vadd.f32 %v1865_v6, %v870_v49 }
 0x23b   : > { %v914_v9 = vmul.f32 %v898_v52, %v1852_v59  ;;  %v922_v62 = vmul.f32 %v906_v53, %v826_v4  ;;  %v718_v10 = vpop.f32.mrf.mxu0  ;;  %v750_v11 = vpop.f32.mrf.mxu1  ;;  %v865_v15 = vmul.f32 %v1339_v54, %v1860_v2  ;;  %v873_v16 = vmul.f32 %v1347_v55, %v856_v12 }
 0x23c   : > { %1245 = vst [vmem:[%s1814_s28 + $0x8] sm:$0xff] %v1213_v60   ;;  %1249 = vst [vmem:[%s1814_s28 + $0x28] sm:$0xff] %v1233_v3   ;;  %v863_v17 = vmul.f32 %v1858_v0, %v718_v10  ;;  %v871_v59 = vmul.f32 %v1878_v35, %v750_v11  ;;  %v903_v4 = vmax.f32 %v887_v5, 0.0  ;;  %v911_v18 = vmax.f32 %v895_v7, 0.0 }
 0x23d   : > { %v1208_v58 = vpack.c.bf16 %v914_v9, %v913_v56  ;;  %v1228_v1 = vpack.c.bf16 %v922_v62, %v921_v57  ;;  %v888_v19 = vadd.f32 %v1865_v6, %v865_v15  ;;  %v896_v20 = vadd.f32 %v1865_v6, %v873_v16 }
 0x23e   : > { %v901_v21 = vmax.f32 %v885_v13, 0.0  ;;  %v909_v22 = vmax.f32 %v893_v14, 0.0  ;;  %v886_v23 = vadd.f32 %v1865_v6, %v863_v17  ;;  %v894_v24 = vadd.f32 %v1865_v6, %v871_v59 }
 0x23f   : > { %1209 = vst [vmem:[%s1814_s28] sm:$0xff] %v1208_v58   ;;  %1248 = vst [vmem:[%s1814_s28 + $0x20] sm:$0xff] %v1228_v1   ;;  %v904_v25 = vmax.f32 %v888_v19, 0.0  ;;  %v912_v27 = vmax.f32 %v896_v20, 0.0  ;;  %v919_v30 = vmul.f32 %v903_v4, %v1856_v63  ;;  %v927_v31 = vmul.f32 %v911_v18, %v1873_v26 }
 0x240   : > { %v902_v28 = vmax.f32 %v886_v23, 0.0  ;;  %v910_v29 = vmax.f32 %v894_v24, 0.0  ;;  %v917_v34 = vmul.f32 %v901_v21, %v1854_v61  ;;  %v925_v36 = vmul.f32 %v909_v22, %v1867_v8 }
 0x241   : > { %v920_v32 = vmul.f32 %v904_v25, %v1860_v2  ;;  %v928_v33 = vmul.f32 %v912_v27, %v856_v12 }
 0x242   : > { %v918_v6 = vmul.f32 %v902_v28, %v1858_v0  ;;  %v926_v37 = vmul.f32 %v910_v29, %v1878_v35 }
 0x243   : > { %v1223_v38 = vpack.c.bf16 %v920_v32, %v919_v30  ;;  %v1243_v39 = vpack.c.bf16 %v928_v33, %v927_v31 }
 0x244   : > { %v1218_v40 = vpack.c.bf16 %v918_v6, %v917_v34  ;;  %v1238_v41 = vpack.c.bf16 %v926_v37, %v925_v36 }
 0x245   : > { %1247 = vst [vmem:[%s1814_s28 + $0x18] sm:$0xff] %v1223_v38   ;;  %1251 = vst [vmem:[%s1814_s28 + $0x38] sm:$0xff] %v1243_v39  }
 0x246   : > { %1246 = vst [vmem:[%s1814_s28 + $0x10] sm:$0xff] %v1218_v40   ;;  %1250 = vst [vmem:[%s1814_s28 + $0x30] sm:$0xff] %v1238_v41  }
 0x247 PF: > { %s1204_s16 = sshll.u32 %s1628_s24, 10  ;;  %s1023_s15 = sshll.u32 %s1814_s28, 4  ;;  %s1920_s15 = int_to_ptr.vmem [resolvable:$true] %s1023_s15 }
 0x248   : > { %s1917_s14 = scalar_lea.hbm %s1986_s5, %s1204_s16  ;;  %s1924_s29 = scalar_lea.sflag [#allocation6], %s315_s18 }
 0x249   : > { %s1528_s21 = scalar_lea.vmem %s1920_s15, 1024  ;;  %p2005_p2 = scmp.ne.s32.totalorder %s1998_s11, 0 }
 0x24a   : > { %p1529_p1 = scmp.ne.s32.totalorder %s1920_s15, %s1528_s21  ;;  %s1647_s24 = smov [#allocation7]  }
 0x24b   : > { %s1532_s12 = sshll.u32 %s1647_s24, 4  ;;  %s1533_s12 = int_to_ptr.vmem [resolvable:$false] %s1532_s12 }
 0x24c   : > { %p1530_p4 = pnand %p1529_p1, %p2005_p2  ;;  %s1534_s17 = scalar_lea.vmem %s1533_s12, 2048 }
 0x24d   : > { %p1535_p6 = scmp.lt.s32.totalorder %s1920_s15, %s1533_s12  ;;  %p1536_p8 = scmp.lt.s32.totalorder %s1534_s17, %s1528_s21 }
 0x24e   : > { %p1531_p5 = pneg %p1530_p4 }
 0x24f   : > { %p1537_p9 = por %p1536_p8, %p1535_p6 }
 0x251   : > { %p1538_p10 = pnand %p1537_p9, %p1531_p5 }
 0x253   : > { %1541 = shalt.err (!%p1538_p10)
}
 0x254   : > { %s1542_s18 = scalar_lea.hbm %s1917_s14, 1024  ;;  %s1546_s13 = scalar_lea.hbm %s1986_s5, 2048 }
 0x255   : > { %p1543_p11 = scmp.ne.s32.totalorder %s1917_s14, %s1542_s18  ;;  %p1547_p3 = scmp.lt.s32.totalorder %s1917_s14, %s1986_s5 }
 0x256   : > { %p1548_p7 = scmp.lt.s32.totalorder %s1546_s13, %s1542_s18 }
 0x257   : > { %p1544_p13 = pnand %p1543_p11, %p2005_p2 }
 0x258   : > { %p1549_p12 = por %p1548_p7, %p1547_p3 }
 0x259   : > { %p1545_p0 = pneg %p1544_p13 }
 0x25b   : > { %p1550_p1 = pnand %p1549_p12, %p1545_p0 }
 0x25d   : > { %1553 = shalt.err (!%p1550_p1)
}
 0x25e   : > { %s1648_s6 = smov 64   ;;  %s1649_s23 = smov 4  }
 0x25f   : > { %1384 = dma.vmem_to_hbm [thread:$0]  (%p2005_p2), %s1920_s15, 1024, %s1917_s14, %s1924_s29, %s1648_s6, %s1648_s6, %s1649_s23  }
 0x260 PF: > { %s2006_s9 = sld [smem:[#allocation10_spill]]  ;;  %p1396_p4 = scmp.ge.s32.totalorder %s1640_s27, 2 }
 0x261   : > { %s2007_s16 = sld [smem:[#allocation14_spill]] }
 0x266   : > { %s1038_s20 = sand.u32 1, %s2006_s9  }
 0x267   : > { %p2008_p5 = scmp.ne.s32.totalorder %s2007_s16, 0  ;;  %s1039_s30 = scalar_lea.sflag [#allocation6], %s1038_s20 }
 0x269   : > { %p1391_p6 = pnand %p1396_p4, %p2008_p5 }
 0x26b   : > { %p1392_p8 = pneg %p1391_p6 }
 0x26d   : > { %1599 = dma.done.wait (%p1392_p8), %s1039_s30, 1024  }
 0x26e   : > { %1601 = vsyncadd (%p1392_p8), %s1039_s30, 4294966272  ;;  %s19_s27 = sadd.s32 1, %s1640_s27   ;;  %s2009_s21 = sld [smem:[#allocation11_spill]] }
 0x26f   : > { %p16_p9 = scmp.ge.s32.totalorder %s19_s27, 6   ;;  %s2010_s20 = sld [smem:[#allocation15_spill]] }
 0x270   : > { %s2011_s11 = sld [smem:[#allocation16_spill]]  ;;  %s2014_s18 = smov %s1608_s19 }
 0x271   : > { %s2012_s14 = sld [smem:[#allocation12_spill]]  ;;  %s2018_s23 = smov %s1632_s25 }
 0x272   : > { %s2013_s15 = sld [smem:[#allocation13_spill]]  ;;  %s2019_s24 = smov %s1636_s26 }
 0x274   : > { %s2015_s19 = smov %s2009_s21  ;;  %s2016_s21 = smov %s1620_s22 }
 0x275   :  { %18 = sbr.rel (!%p16_p9) target bundleno = 7 (0x7), region = 135 }
 0x276   : > { %s2017_s22 = smov %s2011_s11 }
 0x277   : > { %s2020_s25 = smov %s2012_s14 }
 0x278   : > { %s2021_s26 = smov %s2013_s15 }
 0x27a   :  { %1044 = vsyncpa [#allocation5], 1 }
 0x27b   :  { %1046 = vsyncpa [#allocation5 + $0x1], 1 }
 0x27c   :  { %1047 = vsyncpa [#allocation6], 1 }
 0x27d   :  { %1049 = vsyncpa [#allocation6 + $0x1], 1 }

</bundles_post_ra>
